<compile_context>
chip_gen: v7x
topology: tpu7x:2x2x1
jax: 0.10.0
libtpu: 0.0.40
codegen_flags: <defaults>
</compile_context>

<pallas_src>
import functools

import numpy as np
import jax
import jax.numpy as jnp
from jax.experimental import pallas as pl
from jax.experimental.pallas import tpu as pltpu

_LN10 = 2.302585092994045684


def _round_up(x, m):
    return ((x + m - 1) // m) * m


def _chip_tuning():
    """Returns (radiation double-buffer budget in bytes, number of TensorCores)."""
    try:
        kind = jax.devices()[0].device_kind.lower()
    except Exception:  # pragma: no cover - defensive, never expected on TPU
        kind = ""
    if "v7" in kind:
        # 64 MiB VMEM per TC: keep per-step footprint well under ~24 MiB; 2 TCs.
        return 20 * 1024 * 1024, 2
    if "v6" in kind:
        # 128 MiB physical VMEM, single TC: larger sequential tiles are free.
        return 28 * 1024 * 1024, 1
    # v5e (16 MiB scoped-VMEM default) and unknown parts: stay conservative.
    return 12 * 1024 * 1024, 1


# ---------------------------------------------------------------------------
# Fused kernel.
# Inputs (all already mag/phase-split in the wrapper):
#   gpm, gpp, gtm, gtp : gamma pred mag / pred phase / target mag / target phase [B, F]
#   geo                : geometry [B, G]
#   rpm, rpp, rtm, rtp : radiation pred mag / pred phase / target mag / target phase,
#                        blocked (TR, L_pad) tiles of the zero-padded [R_pad, L_pad] views.
# Output: f32[NB, 8, 128]; sublane 0, lane 0 = pre-weighted radiation partial of this
# block, lane 1 = pre-weighted gamma + geo (+ smoothness) contribution (block 0 only).
# ---------------------------------------------------------------------------
def _fused_kernel(gpm_ref, gpp_ref, gtm_ref, gtp_ref, geo_ref,
                  rpm_ref, rpp_ref, rtm_ref, rtp_ref, out_ref, *,
                  w_rad_huber, w_rad_phase, w_rad_euc,
                  w_g_huber, w_g_phase, w_g_euc, w_geo,
                  w_mag_smooth, w_phase_smooth, compute_smooth):
    lane = jax.lax.broadcasted_iota(jnp.int32, (8, 128), 1)

    # ---- radiation block (large, lane-dense tile) ----
    pm = rpm_ref[...].astype(jnp.float32)
    pp = rpp_ref[...].astype(jnp.float32)
    tm = rtm_ref[...].astype(jnp.float32)
    tp = rtp_ref[...].astype(jnp.float32)

    d = pm - tm
    ad = jnp.abs(d)
    huber_e = jnp.where(ad < 1.0, 0.5 * d * d, ad - 0.5)

    # One cos per element, reused by the circular-phase term and the
    # law-of-cosines euclidean distance (EUP: 1 cos + 2 exp + 1 sqrt per elem).
    cosd = jnp.cos(pp - tp)
    phase_e = 1.0 - cosd

    pm_lin = jnp.exp(pm * (_LN10 / 10.0))     # 10^(pm/10)
    tm_lin = jnp.exp(tm * (_LN10 / 10.0))
    radicand = pm_lin * pm_lin + tm_lin * tm_lin - 2.0 * pm_lin * tm_lin * cosd
    # Clamp: floating-point cancellation can drive the radicand slightly < 0.
    euc_e = jnp.sqrt(jnp.maximum(radicand, 0.0))

    # Loss weights are trace-time constants -> fold the three radiation terms
    # into one cross-lane reduction. Zero-padded rows/lanes contribute exactly 0.
    rad_sum = jnp.sum(w_rad_huber * huber_e + w_rad_phase * phase_e
                      + w_rad_euc * euc_e)
    out_ref[...] = jnp.where(lane == 0, rad_sum, 0.0)[None, :, :]

    # ---- gamma + geometry terms: tiny, run once on grid step 0 ----
    @pl.when(pl.program_id(0) == 0)
    def _():
        gpm = gpm_ref[...].astype(jnp.float32)   # linear magnitude
        gpp = gpp_ref[...].astype(jnp.float32)
        gtm = gtm_ref[...].astype(jnp.float32)   # dB magnitude
        gtp = gtp_ref[...].astype(jnp.float32)
        geo = geo_ref[...].astype(jnp.float32)

        pm_db = (10.0 / _LN10) * jnp.log(gpm)    # 10 * log10(pred magnitude)

        dd = pm_db - gtm
        add = jnp.abs(dd)
        g_huber = jnp.sum(jnp.where(add < 1.0, 0.5 * dd * dd, add - 0.5))

        gcos = jnp.cos(gpp - gtp)
        g_phase = jnp.sum(1.0 - gcos)

        gtm_lin = jnp.exp(gtm * (_LN10 / 10.0))
        g_rad = gpm * gpm + gtm_lin * gtm_lin - 2.0 * gpm * gtm_lin * gcos
        g_euc = jnp.sum(jnp.sqrt(jnp.maximum(g_rad, 0.0)))

        geo_sum = jnp.sum(geo)

        scalar = (w_g_huber * g_huber + w_g_phase * g_phase
                  + w_g_euc * g_euc + w_geo * geo_sum)

        if compute_smooth:
            # Only traced when a smoothness weight is nonzero (non-default path).
            so = jnp.abs(pm_db[:, 2:] - 2.0 * pm_db[:, 1:-1] + pm_db[:, :-2])
            mag_smooth = jnp.sum(so)
            pi = jnp.float32(np.pi)
            cd = gpp[:, 1:] - gpp[:, :-1]
            cd = jnp.where(jnp.abs(cd) > pi, 2.0 * pi - jnp.abs(cd), cd)
            cd2 = cd[:, 1:] - cd[:, :-1]
            cd2 = jnp.where(jnp.abs(cd2) > pi, 2.0 * pi - jnp.abs(cd2), cd2)
            phase_smooth = jnp.sum(jnp.abs(cd2))
            scalar = scalar + w_mag_smooth * mag_smooth + w_phase_smooth * phase_smooth

        out_ref[...] = out_ref[...] + jnp.where(lane == 1, scalar, 0.0)[None, :, :]


# ---------------------------------------------------------------------------
# Wrapper: GammaRad_loss.forward
# ---------------------------------------------------------------------------
def gammarad_loss(gamma_pred, radiation_pred, geo_pred,
                  gamma_target, radiation_target,
                  lamda=1.0, rad_phase_fac=1.0, geo_weight=1e-4, euc_weight=0.01,
                  mag_smooth_weight=0.0, phase_smooth_weight=0.0, euc_lamda=1.0):
    B, twoF = gamma_pred.shape
    F = twoF // 2
    _, C2, H, W = radiation_pred.shape
    C = C2 // 2
    L = H * W
    R = B * C

    compute_smooth = (float(mag_smooth_weight) != 0.0) or (float(phase_smooth_weight) != 0.0)

    # ---- wrapper-side split of mag/phase (cheap XLA slices / reshapes) ----
    gpm = gamma_pred[:, :F]
    gpp = gamma_pred[:, F:]
    gtm = gamma_target[:, :F]
    gtp = gamma_target[:, F:]

    rpm = radiation_pred[:, :C].reshape(R, L)
    rpp = radiation_pred[:, C:].reshape(R, L)
    rtm = radiation_target[:, :C].reshape(R, L)
    rtp = radiation_target[:, C:].reshape(R, L)

    geo2 = geo_pred.reshape(geo_pred.shape[0], -1) if geo_pred.ndim >= 2 \
        else geo_pred.reshape(1, -1)

    # ---- lane-dense row tile for the radiation path (generation-aware) ----
    rad_budget, num_tc = _chip_tuning()
    itemsize = jnp.dtype(radiation_pred.dtype).itemsize
    L_pad = _round_up(L, 128)                       # full unmasked vreg rows
    bytes_per_row = L_pad * itemsize
    # 4 radiation streams x 2 pipeline buffers per step.
    budget_rows = max(8, rad_budget // (8 * bytes_per_row))
    max_tr = max(8, (budget_rows // 8) * 8)
    nb_target = pl.cdiv(R, max_tr)
    if num_tc == 2:
        # Even block count so both TensorCores (v7x megacore) get equal work.
        nb_target = max(2, nb_target + (nb_target % 2))
    TR = _round_up(pl.cdiv(R, nb_target), 8)
    NB = pl.cdiv(R, TR)
    R_pad = NB * TR

    if R_pad != R or L_pad != L:
        # Zero padding is exactly neutral: huber(0)=0, 1-cos(0)=0,
        # sqrt(max(1 + 1 - 2*cos(0), 0)) = 0.
        pad = ((0, R_pad - R), (0, L_pad - L))
        rpm = jnp.pad(rpm, pad)
        rpp = jnp.pad(rpp, pad)
        rtm = jnp.pad(rtm, pad)
        rtp = jnp.pad(rtp, pad)

    # ---- explicit VMEM budget (do not rely on the per-generation default) ----
    def _vmem_bytes(shape, dt):
        s = (1,) * max(0, 2 - len(shape)) + tuple(shape)
        lead = 1
        for dim in s[:-2]:
            lead *= dim
        return lead * _round_up(s[-2], 8) * _round_up(s[-1], 128) * jnp.dtype(dt).itemsize

    footprint = 4 * 2 * TR * L_pad * itemsize                     # radiation dbl-buffer
    footprint += 2 * 4 * _vmem_bytes((B, F), gamma_pred.dtype)    # resident gamma views
    footprint += 2 * _vmem_bytes(geo2.shape, geo2.dtype)          # resident geo
    footprint += 2 * 8 * 128 * 4                                  # output tiles
    vmem_limit = int(min(max(footprint + (4 << 20), 16 << 20), 60 << 20))

    n_gamma = B * F
    n_rad = B * C * H * W
    n_geo = int(geo_pred.size)
    n_smooth = max(B * (F - 2), 1)

    # All weights are trace-time Python floats -> pre-fold the per-term scale
    # factors so the kernel produces pre-weighted partial sums directly.
    kernel = functools.partial(
        _fused_kernel,
        w_rad_huber=float(lamda) / n_rad,
        w_rad_phase=float(lamda) * float(rad_phase_fac) / n_rad,
        w_rad_euc=float(euc_weight) * float(euc_lamda) / n_rad,
        w_g_huber=1.0 / n_gamma,
        w_g_phase=1.0 / n_gamma,
        w_g_euc=float(euc_weight) / n_gamma,
        w_geo=float(geo_weight) / n_geo,
        w_mag_smooth=(float(mag_smooth_weight) / n_smooth) if compute_smooth else 0.0,
        w_phase_smooth=(float(phase_smooth_weight) / n_smooth) if compute_smooth else 0.0,
        compute_smooth=compute_smooth)

    gamma_spec = pl.BlockSpec((B, F), lambda i: (0, 0))
    geo_spec = pl.BlockSpec(tuple(geo2.shape), lambda i: (0, 0))
    rad_spec = pl.BlockSpec((TR, L_pad), lambda i: (i, 0))
    # TODO(synk): if xprof shows exposed DMA at very small R or L, add
    # pipeline_mode=pl.Buffered(3) to rad_spec.

    # TODO(synk): gamma/geo are held fully resident in VMEM (they are tiny by
    # contract); tile them like the radiation path if B*F ever grows large.
    partials = pl.pallas_call(
        kernel,
        out_shape=jax.ShapeDtypeStruct((NB, 8, 128), jnp.float32),
        grid=(NB,),
        in_specs=[gamma_spec, gamma_spec, gamma_spec, gamma_spec, geo_spec,
                  rad_spec, rad_spec, rad_spec, rad_spec],
        out_specs=pl.BlockSpec((1, 8, 128), lambda i: (i, 0, 0)),
        compiler_params=pltpu.CompilerParams(
            dimension_semantics=("parallel",),
            vmem_limit_bytes=vmem_limit),
    )(gpm, gpp, gtm, gtp, geo2, rpm, rpp, rtm, rtp)

    # lane 0 = per-block weighted radiation partials; lane 1 = gamma+geo(+smooth)
    # contribution (written only by block 0, zero elsewhere).
    # TODO(synk): PyTorch module prints intermediate losses; host-side printing omitted.
    return jnp.sum(partials[:, 0, 0:2])


# ---------------------------------------------------------------------------
# Pure-JAX reference (mirror of the PyTorch forward) for a sanity check.
# ---------------------------------------------------------------------------
def reference_loss(gamma_pred, radiation_pred, geo_pred,
                   gamma_target, radiation_target,
                   lamda=1.0, rad_phase_fac=1.0, geo_weight=1e-4, euc_weight=0.01):
    F = gamma_pred.shape[1] // 2
    pm = gamma_pred[:, :F]
    pp = gamma_pred[:, F:]
    tm = gamma_target[:, :F]
    tp = gamma_target[:, F:]
    pm_db = (10.0 / _LN10) * jnp.log(pm)

    d = pm_db - tm
    ad = jnp.abs(d)
    mag_loss = jnp.mean(jnp.where(ad < 1.0, 0.5 * d * d, ad - 0.5))
    phase_loss = jnp.mean(1.0 - jnp.cos(pp - tp))
    gamma_loss_val = mag_loss + phase_loss   # smoothness weights are 0

    C = radiation_pred.shape[1] // 2
    rpm = radiation_pred[:, :C]
    rpp = radiation_pred[:, C:]
    rtm = radiation_target[:, :C]
    rtp = radiation_target[:, C:]
    d = rpm - rtm
    ad = jnp.abs(d)
    rad_loss_val = jnp.mean(jnp.where(ad < 1.0, 0.5 * d * d, ad - 0.5)) \
        + rad_phase_fac * jnp.mean(1.0 - jnp.cos(rpp - rtp))

    rpm_lin = jnp.exp(rpm * (_LN10 / 10.0))
    rtm_lin = jnp.exp(rtm * (_LN10 / 10.0))
    rad_euc = jnp.mean(jnp.sqrt(
        (rpm_lin * jnp.cos(rpp) - rtm_lin * jnp.cos(rtp)) ** 2
        + (rpm_lin * jnp.sin(rpp) - rtm_lin * jnp.sin(rtp)) ** 2))
    tm_lin = jnp.exp(tm * (_LN10 / 10.0))
    gamma_euc = jnp.mean(jnp.sqrt(
        (pm * jnp.cos(pp) - tm_lin * jnp.cos(tp)) ** 2
        + (pm * jnp.sin(pp) - tm_lin * jnp.sin(tp)) ** 2))
    euc_loss_val = gamma_euc + 1.0 * rad_euc

    geo_loss_val = geo_weight * jnp.mean(geo_pred)

    return gamma_loss_val + lamda * rad_loss_val + geo_loss_val \
        + euc_weight * euc_loss_val


if __name__ == "__main__":
    key = jax.random.PRNGKey(0)
    kgm, kgp, ktm, ktp, krp1, krp2, krt1, krt2, kgeo = jax.random.split(key, 9)

    B, F = 2, 8           # gamma: [B, 2F]
    C, H, W = 2, 16, 16   # radiation: [B, 2C, H, W]
    G = 32                # geo: [B, G]

    gamma_pred = jnp.concatenate([
        jax.random.uniform(kgm, (B, F), jnp.float32, 0.05, 1.0),     # linear magnitude
        jax.random.uniform(kgp, (B, F), jnp.float32, -np.pi, np.pi)  # phase
    ], axis=1)
    gamma_target = jnp.concatenate([
        jax.random.uniform(ktm, (B, F), jnp.float32, -20.0, 0.0),    # dB magnitude
        jax.random.uniform(ktp, (B, F), jnp.float32, -np.pi, np.pi)
    ], axis=1)
    radiation_pred = jnp.concatenate([
        jax.random.uniform(krp1, (B, C, H, W), jnp.float32, -10.0, 5.0),
        jax.random.uniform(krp2, (B, C, H, W), jnp.float32, -np.pi, np.pi)
    ], axis=1)
    radiation_target = jnp.concatenate([
        jax.random.uniform(krt1, (B, C, H, W), jnp.float32, -10.0, 5.0),
        jax.random.uniform(krt2, (B, C, H, W), jnp.float32, -np.pi, np.pi)
    ], axis=1)
    geo_pred = jax.random.uniform(kgeo, (B, G), jnp.float32, 0.0, 1.0)

    loss = gammarad_loss(gamma_pred, radiation_pred, geo_pred,
                         gamma_target, radiation_target)
    loss = jax.block_until_ready(loss)

    ref = jax.block_until_ready(
        reference_loss(gamma_pred, radiation_pred, geo_pred,
                       gamma_target, radiation_target))

    assert np.isfinite(float(loss))
    np.testing.assert_allclose(np.asarray(loss), np.asarray(ref),
                               rtol=2e-4, atol=1e-5)
    print("KERNEL_OK")
</pallas_src>

<mosaic_0001>
module attributes {stable_mosaic.version = 11 : i64} {
  func.func @_fused_kernel(%arg0: i32, %arg1: memref<2x8xf32, #tpu.memory_space<vmem>>, %arg2: memref<2x8xf32, #tpu.memory_space<vmem>>, %arg3: memref<2x8xf32, #tpu.memory_space<vmem>>, %arg4: memref<2x8xf32, #tpu.memory_space<vmem>>, %arg5: memref<2x32xf32, #tpu.memory_space<vmem>>, %arg6: memref<8x256xf32, #tpu.memory_space<vmem>>, %arg7: memref<8x256xf32, #tpu.memory_space<vmem>>, %arg8: memref<8x256xf32, #tpu.memory_space<vmem>>, %arg9: memref<8x256xf32, #tpu.memory_space<vmem>>, %arg10: memref<1x8x128xf32, #tpu.memory_space<vmem>>) attributes {dimension_semantics = [#tpu.dimension_semantics<parallel>], iteration_bounds = array<i64: 1>, scalar_prefetch = 0 : i64, scratch_operands = 0 : i64, tpu.core_type = #tpu.core_type<tc>, window_params = [{pipeline_mode = #tpu.pipeline_mode<synchronous>, transform_indices = @transform_0, window_bounds = array<i64: 2, 8>}, {pipeline_mode = #tpu.pipeline_mode<synchronous>, transform_indices = @transform_1, window_bounds = array<i64: 2, 8>}, {pipeline_mode = #tpu.pipeline_mode<synchronous>, transform_indices = @transform_2, window_bounds = array<i64: 2, 8>}, {pipeline_mode = #tpu.pipeline_mode<synchronous>, transform_indices = @transform_3, window_bounds = array<i64: 2, 8>}, {pipeline_mode = #tpu.pipeline_mode<synchronous>, transform_indices = @transform_4, window_bounds = array<i64: 2, 32>}, {transform_indices = @transform_5, window_bounds = array<i64: 8, 256>}, {transform_indices = @transform_6, window_bounds = array<i64: 8, 256>}, {transform_indices = @transform_7, window_bounds = array<i64: 8, 256>}, {transform_indices = @transform_8, window_bounds = array<i64: 8, 256>}, {transform_indices = @transform_9, window_bounds = array<i64: 1, 8, 128>}]} {
    %0 = tpu.iota {dimensions = array<i32: 1>} : vector<8x128xi32>
    %c0 = arith.constant 0 : index
    %c0_0 = arith.constant 0 : index
    %1 = vector.load %arg6[%c0, %c0_0] : memref<8x256xf32, #tpu.memory_space<vmem>>, vector<8x256xf32>
    %c0_1 = arith.constant 0 : index
    %c0_2 = arith.constant 0 : index
    %2 = vector.load %arg7[%c0_1, %c0_2] : memref<8x256xf32, #tpu.memory_space<vmem>>, vector<8x256xf32>
    %c0_3 = arith.constant 0 : index
    %c0_4 = arith.constant 0 : index
    %3 = vector.load %arg8[%c0_3, %c0_4] : memref<8x256xf32, #tpu.memory_space<vmem>>, vector<8x256xf32>
    %c0_5 = arith.constant 0 : index
    %c0_6 = arith.constant 0 : index
    %4 = vector.load %arg9[%c0_5, %c0_6] : memref<8x256xf32, #tpu.memory_space<vmem>>, vector<8x256xf32>
    %5 = arith.subf %1, %3 : vector<8x256xf32>
    %6 = math.absf %5 : vector<8x256xf32>
    %cst = arith.constant 1.000000e+00 : f32
    %7 = vector.broadcast %cst : f32 to vector<8x256xf32>
    %8 = arith.cmpf olt, %6, %7 : vector<8x256xf32>
    %cst_7 = arith.constant 5.000000e-01 : f32
    %9 = vector.broadcast %cst_7 : f32 to vector<8x256xf32>
    %10 = arith.mulf %9, %5 : vector<8x256xf32>
    %11 = arith.mulf %10, %5 : vector<8x256xf32>
    %cst_8 = arith.constant 5.000000e-01 : f32
    %12 = vector.broadcast %cst_8 : f32 to vector<8x256xf32>
    %13 = arith.subf %6, %12 : vector<8x256xf32>
    %14 = arith.select %8, %11, %13 : vector<8x256xi1>, vector<8x256xf32>
    %15 = arith.subf %2, %4 : vector<8x256xf32>
    %16 = math.cos %15 : vector<8x256xf32>
    %cst_9 = arith.constant 1.000000e+00 : f32
    %17 = vector.broadcast %cst_9 : f32 to vector<8x256xf32>
    %18 = arith.subf %17, %16 : vector<8x256xf32>
    %cst_10 = arith.constant 0.23025851 : f32
    %19 = vector.broadcast %cst_10 : f32 to vector<8x256xf32>
    %20 = arith.mulf %1, %19 : vector<8x256xf32>
    %21 = math.exp %20 : vector<8x256xf32>
    %cst_11 = arith.constant 0.23025851 : f32
    %22 = vector.broadcast %cst_11 : f32 to vector<8x256xf32>
    %23 = arith.mulf %3, %22 : vector<8x256xf32>
    %24 = math.exp %23 : vector<8x256xf32>
    %25 = arith.mulf %21, %21 : vector<8x256xf32>
    %26 = arith.mulf %24, %24 : vector<8x256xf32>
    %27 = arith.addf %25, %26 : vector<8x256xf32>
    %cst_12 = arith.constant 2.000000e+00 : f32
    %28 = vector.broadcast %cst_12 : f32 to vector<8x256xf32>
    %29 = arith.mulf %28, %21 : vector<8x256xf32>
    %30 = arith.mulf %29, %24 : vector<8x256xf32>
    %31 = arith.mulf %30, %16 : vector<8x256xf32>
    %32 = arith.subf %27, %31 : vector<8x256xf32>
    %cst_13 = arith.constant 0.000000e+00 : f32
    %33 = vector.broadcast %cst_13 : f32 to vector<8x256xf32>
    %34 = arith.maximumf %32, %33 : vector<8x256xf32>
    %35 = math.sqrt %34 : vector<8x256xf32>
    %cst_14 = arith.constant 9.765625E-4 : f32
    %36 = vector.broadcast %cst_14 : f32 to vector<8x256xf32>
    %37 = arith.mulf %36, %14 : vector<8x256xf32>
    %cst_15 = arith.constant 9.765625E-4 : f32
    %38 = vector.broadcast %cst_15 : f32 to vector<8x256xf32>
    %39 = arith.mulf %38, %18 : vector<8x256xf32>
    %40 = arith.addf %37, %39 : vector<8x256xf32>
    %cst_16 = arith.constant 9.76562478E-6 : f32
    %41 = vector.broadcast %cst_16 : f32 to vector<8x256xf32>
    %42 = arith.mulf %41, %35 : vector<8x256xf32>
    %43 = arith.addf %40, %42 : vector<8x256xf32>
    %44 = vector.shape_cast %43 : vector<8x256xf32> to vector<1x8x256xf32>
    %cst_17 = arith.constant dense<0.000000e+00> : vector<1xf32>
    %45 = vector.multi_reduction <add>, %44, %cst_17 [1, 2] : vector<1x8x256xf32> to vector<1xf32>
    %46 = vector.shape_cast %45 : vector<1xf32> to vector<1x1x1xf32>
    %47 = vector.extract %46[0, 0, 0] : f32 from vector<1x1x1xf32>
    %c0_i32 = arith.constant 0 : i32
    %48 = vector.broadcast %c0_i32 : i32 to vector<8x128xi32>
    %49 = arith.cmpi eq, %0, %48 : vector<8x128xi32>
    %cst_18 = arith.constant 0.000000e+00 : f32
    %50 = vector.broadcast %47 : f32 to vector<8x128xf32>
    %51 = vector.broadcast %cst_18 : f32 to vector<8x128xf32>
    %52 = arith.select %49, %50, %51 : vector<8x128xi1>, vector<8x128xf32>
    %53 = vector.shape_cast %52 : vector<8x128xf32> to vector<1x8x128xf32>
    %c0_19 = arith.constant 0 : index
    %c0_20 = arith.constant 0 : index
    %c0_21 = arith.constant 0 : index
    %54 = vector.load %arg10[%c0_19, %c0_20, %c0_21] : memref<1x8x128xf32, #tpu.memory_space<vmem>>, vector<1x8x128xf32>
    tpu.vector_store %arg10[%c0_19, %c0_20, %c0_21], %53 {strides = array<i32>} : memref<1x8x128xf32, #tpu.memory_space<vmem>>, vector<1x8x128xf32>,
    %c0_i32_22 = arith.constant 0 : i32
    %55 = arith.cmpi eq, %arg0, %c0_i32_22 : i32
    %56 = arith.extui %55 : i1 to i32
    %c0_i32_23 = arith.constant 0 : i32
    %57 = arith.cmpi ne, %56, %c0_i32_23 : i32
    scf.if %57 {
      %c0_24 = arith.constant 0 : index
      %c0_25 = arith.constant 0 : index
      %58 = vector.load %arg1[%c0_24, %c0_25] : memref<2x8xf32, #tpu.memory_space<vmem>>, vector<2x8xf32>
      %c0_26 = arith.constant 0 : index
      %c0_27 = arith.constant 0 : index
      %59 = vector.load %arg2[%c0_26, %c0_27] : memref<2x8xf32, #tpu.memory_space<vmem>>, vector<2x8xf32>
      %c0_28 = arith.constant 0 : index
      %c0_29 = arith.constant 0 : index
      %60 = vector.load %arg3[%c0_28, %c0_29] : memref<2x8xf32, #tpu.memory_space<vmem>>, vector<2x8xf32>
      %c0_30 = arith.constant 0 : index
      %c0_31 = arith.constant 0 : index
      %61 = vector.load %arg4[%c0_30, %c0_31] : memref<2x8xf32, #tpu.memory_space<vmem>>, vector<2x8xf32>
      %c0_32 = arith.constant 0 : index
      %c0_33 = arith.constant 0 : index
      %62 = vector.load %arg5[%c0_32, %c0_33] : memref<2x32xf32, #tpu.memory_space<vmem>>, vector<2x32xf32>
      %63 = math.log %58 : vector<2x8xf32>
      %cst_34 = arith.constant 4.34294462 : f32
      %64 = vector.broadcast %cst_34 : f32 to vector<2x8xf32>
      %65 = arith.mulf %64, %63 : vector<2x8xf32>
      %66 = arith.subf %65, %60 : vector<2x8xf32>
      %67 = math.absf %66 : vector<2x8xf32>
      %cst_35 = arith.constant 1.000000e+00 : f32
      %68 = vector.broadcast %cst_35 : f32 to vector<2x8xf32>
      %69 = arith.cmpf olt, %67, %68 : vector<2x8xf32>
      %cst_36 = arith.constant 5.000000e-01 : f32
      %70 = vector.broadcast %cst_36 : f32 to vector<2x8xf32>
      %71 = arith.mulf %70, %66 : vector<2x8xf32>
      %72 = arith.mulf %71, %66 : vector<2x8xf32>
      %cst_37 = arith.constant 5.000000e-01 : f32
      %73 = vector.broadcast %cst_37 : f32 to vector<2x8xf32>
      %74 = arith.subf %67, %73 : vector<2x8xf32>
      %75 = arith.select %69, %72, %74 : vector<2x8xi1>, vector<2x8xf32>
      %76 = vector.shape_cast %75 : vector<2x8xf32> to vector<1x2x8xf32>
      %cst_38 = arith.constant dense<0.000000e+00> : vector<1xf32>
      %77 = vector.multi_reduction <add>, %76, %cst_38 [1, 2] : vector<1x2x8xf32> to vector<1xf32>
      %78 = vector.shape_cast %77 : vector<1xf32> to vector<1x1x1xf32>
      %79 = vector.extract %78[0, 0, 0] : f32 from vector<1x1x1xf32>
      %80 = arith.subf %59, %61 : vector<2x8xf32>
      %81 = math.cos %80 : vector<2x8xf32>
      %cst_39 = arith.constant 1.000000e+00 : f32
      %82 = vector.broadcast %cst_39 : f32 to vector<2x8xf32>
      %83 = arith.subf %82, %81 : vector<2x8xf32>
      %84 = vector.shape_cast %83 : vector<2x8xf32> to vector<1x2x8xf32>
      %cst_40 = arith.constant dense<0.000000e+00> : vector<1xf32>
      %85 = vector.multi_reduction <add>, %84, %cst_40 [1, 2] : vector<1x2x8xf32> to vector<1xf32>
      %86 = vector.shape_cast %85 : vector<1xf32> to vector<1x1x1xf32>
      %87 = vector.extract %86[0, 0, 0] : f32 from vector<1x1x1xf32>
      %cst_41 = arith.constant 0.23025851 : f32
      %88 = vector.broadcast %cst_41 : f32 to vector<2x8xf32>
      %89 = arith.mulf %60, %88 : vector<2x8xf32>
      %90 = math.exp %89 : vector<2x8xf32>
      %91 = arith.mulf %58, %58 : vector<2x8xf32>
      %92 = arith.mulf %90, %90 : vector<2x8xf32>
      %93 = arith.addf %91, %92 : vector<2x8xf32>
      %cst_42 = arith.constant 2.000000e+00 : f32
      %94 = vector.broadcast %cst_42 : f32 to vector<2x8xf32>
      %95 = arith.mulf %94, %58 : vector<2x8xf32>
      %96 = arith.mulf %95, %90 : vector<2x8xf32>
      %97 = arith.mulf %96, %81 : vector<2x8xf32>
      %98 = arith.subf %93, %97 : vector<2x8xf32>
      %cst_43 = arith.constant 0.000000e+00 : f32
      %99 = vector.broadcast %cst_43 : f32 to vector<2x8xf32>
      %100 = arith.maximumf %98, %99 : vector<2x8xf32>
      %101 = math.sqrt %100 : vector<2x8xf32>
      %102 = vector.shape_cast %101 : vector<2x8xf32> to vector<1x2x8xf32>
      %cst_44 = arith.constant dense<0.000000e+00> : vector<1xf32>
      %103 = vector.multi_reduction <add>, %102, %cst_44 [1, 2] : vector<1x2x8xf32> to vector<1xf32>
      %104 = vector.shape_cast %103 : vector<1xf32> to vector<1x1x1xf32>
      %105 = vector.extract %104[0, 0, 0] : f32 from vector<1x1x1xf32>
      %106 = vector.shape_cast %62 : vector<2x32xf32> to vector<1x2x32xf32>
      %cst_45 = arith.constant dense<0.000000e+00> : vector<1xf32>
      %107 = vector.multi_reduction <add>, %106, %cst_45 [1, 2] : vector<1x2x32xf32> to vector<1xf32>
      %108 = vector.shape_cast %107 : vector<1xf32> to vector<1x1x1xf32>
      %109 = vector.extract %108[0, 0, 0] : f32 from vector<1x1x1xf32>
      %cst_46 = arith.constant 6.250000e-02 : f32
      %110 = arith.mulf %cst_46, %79 : f32
      %cst_47 = arith.constant 6.250000e-02 : f32
      %111 = arith.mulf %cst_47, %87 : f32
      %112 = arith.addf %110, %111 : f32
      %cst_48 = arith.constant 6.250000e-04 : f32
      %113 = arith.mulf %cst_48, %105 : f32
      %114 = arith.addf %112, %113 : f32
      %cst_49 = arith.constant 1.562500e-06 : f32
      %115 = arith.mulf %cst_49, %109 : f32
      %116 = arith.addf %114, %115 : f32
      %c0_50 = arith.constant 0 : index
      %c0_51 = arith.constant 0 : index
      %c0_52 = arith.constant 0 : index
      %117 = vector.load %arg10[%c0_50, %c0_51, %c0_52] : memref<1x8x128xf32, #tpu.memory_space<vmem>>, vector<1x8x128xf32>
      %c1_i32 = arith.constant 1 : i32
      %118 = vector.broadcast %c1_i32 : i32 to vector<8x128xi32>
      %119 = arith.cmpi eq, %0, %118 : vector<8x128xi32>
      %cst_53 = arith.constant 0.000000e+00 : f32
      %120 = vector.broadcast %116 : f32 to vector<8x128xf32>
      %121 = vector.broadcast %cst_53 : f32 to vector<8x128xf32>
      %122 = arith.select %119, %120, %121 : vector<8x128xi1>, vector<8x128xf32>
      %123 = vector.shape_cast %122 : vector<8x128xf32> to vector<1x8x128xf32>
      %124 = arith.addf %117, %123 : vector<1x8x128xf32>
      %c0_54 = arith.constant 0 : index
      %c0_55 = arith.constant 0 : index
      %c0_56 = arith.constant 0 : index
      %125 = vector.load %arg10[%c0_54, %c0_55, %c0_56] : memref<1x8x128xf32, #tpu.memory_space<vmem>>, vector<1x8x128xf32>
      tpu.vector_store %arg10[%c0_54, %c0_55, %c0_56], %124 {strides = array<i32>} : memref<1x8x128xf32, #tpu.memory_space<vmem>>, vector<1x8x128xf32>,
    } else {
    }
    return
  }
  func.func @transform_0(%arg0: i32) -> (i32, i32) {
    %c0_i32 = arith.constant 0 : i32
    %c0_i32_0 = arith.constant 0 : i32
    %c0_i32_1 = arith.constant 0 : i32
    return %c0_i32, %c0_i32_0 : i32, i32
  }
  func.func @transform_1(%arg0: i32) -> (i32, i32) {
    %c0_i32 = arith.constant 0 : i32
    %c0_i32_0 = arith.constant 0 : i32
    %c0_i32_1 = arith.constant 0 : i32
    return %c0_i32, %c0_i32_0 : i32, i32
  }
  func.func @transform_2(%arg0: i32) -> (i32, i32) {
    %c0_i32 = arith.constant 0 : i32
    %c0_i32_0 = arith.constant 0 : i32
    %c0_i32_1 = arith.constant 0 : i32
    return %c0_i32, %c0_i32_0 : i32, i32
  }
  func.func @transform_3(%arg0: i32) -> (i32, i32) {
    %c0_i32 = arith.constant 0 : i32
    %c0_i32_0 = arith.constant 0 : i32
    %c0_i32_1 = arith.constant 0 : i32
    return %c0_i32, %c0_i32_0 : i32, i32
  }
  func.func @transform_4(%arg0: i32) -> (i32, i32) {
    %c0_i32 = arith.constant 0 : i32
    %c0_i32_0 = arith.constant 0 : i32
    %c0_i32_1 = arith.constant 0 : i32
    return %c0_i32, %c0_i32_0 : i32, i32
  }
  func.func @transform_5(%arg0: i32) -> (i32, i32) {
    %c0_i32 = arith.constant 0 : i32
    %c0_i32_0 = arith.constant 0 : i32
    return %arg0, %c0_i32 : i32, i32
  }
  func.func @transform_6(%arg0: i32) -> (i32, i32) {
    %c0_i32 = arith.constant 0 : i32
    %c0_i32_0 = arith.constant 0 : i32
    return %arg0, %c0_i32 : i32, i32
  }
  func.func @transform_7(%arg0: i32) -> (i32, i32) {
    %c0_i32 = arith.constant 0 : i32
    %c0_i32_0 = arith.constant 0 : i32
    return %arg0, %c0_i32 : i32, i32
  }
  func.func @transform_8(%arg0: i32) -> (i32, i32) {
    %c0_i32 = arith.constant 0 : i32
    %c0_i32_0 = arith.constant 0 : i32
    return %arg0, %c0_i32 : i32, i32
  }
  func.func @transform_9(%arg0: i32) -> (i32, i32, i32) {
    %c0_i32 = arith.constant 0 : i32
    %c0_i32_0 = arith.constant 0 : i32
    %c0_i32_1 = arith.constant 0 : i32
    return %arg0, %c0_i32, %c0_i32_0 : i32, i32, i32
  }
}

</mosaic_0001>

<bundles_post_ra>
// kernel: tpu_custom_call.1
= control target key start
LH: loop header
LB: loop body
LE: loop exit
PB: predicated region body
PF: predicated region fallthrough
CT: control target
= control target key end

     0   :  { %14 = vsyncpa [#allocation3], 0  ;;  %s1297_s0 = inlined_call_operand.hbm [shape: f32[2,8], index: 0, kind: input, shape index: {}]   ;;  %s1298_s1 = inlined_call_operand.vmem [shape: f32[2,8], index: 1, kind: input, shape index: {}]   ;;  %s1299_s2 = inlined_call_operand.hbm [shape: f32[2,8], index: 2, kind: input, shape index: {}]   ;;  %s1300_s3 = inlined_call_operand.hbm [shape: f32[2,8], index: 3, kind: input, shape index: {}]   ;;  %s1301_s4 = inlined_call_operand.hbm [shape: f32[2,32], index: 4, kind: input, shape index: {}]   ;;  %s1302_s5 = inlined_call_operand.vmem [shape: f32[8,256], index: 5, kind: input, shape index: {}]   ;;  %s1303_s6 = inlined_call_operand.hbm [shape: f32[8,256], index: 6, kind: input, shape index: {}]   ;;  %s1304_s7 = inlined_call_operand.hbm [shape: f32[8,256], index: 7, kind: input, shape index: {}]   ;;  %s1305_s8 = inlined_call_operand.hbm [shape: f32[8,256], index: 8, kind: input, shape index: {}]   ;;  %s1306_s9 = inlined_call_operand.hbm [shape: f32[1,8,128], index: 9, kind: output, shape index: {}]  }
   0x1   :  { %15 = vsyncpa [#allocation6], 0 }
   0x2   :  { %16 = vsyncpa [#allocation9], 0 }
   0x3   :  { %17 = vsyncpa [#allocation12], 0 }
   0x4   :  { %18 = vsyncpa [#allocation4], 0  ;;  %s896_s30 = smov [#allocation5]   ;;  %s897_s11 = smov [#allocation8]  }
   0x5   :  { %s37_s10 = sshll.u32 %s896_s30, 4  ;;  %s57_s12 = sshll.u32 %s897_s11, 4  ;;  %s38_s10 = int_to_ptr.vmem [resolvable:$true] %s37_s10  ;;  %s58_s12 = int_to_ptr.vmem [resolvable:$true] %s57_s12 }
   0x6   :  { %s710_s15 = scalar_lea.hbm %s1299_s2, 32 }
   0x7   :  { %p711_p0 = scmp.ne.s32.totalorder %s1299_s2, %s710_s15  ;;  %p714_p1 = scmp.lt.u32.totalorder %s710_s15, %s1299_s2 }
   0x9   :  { %p716_p2 = pnand %p714_p1, %p711_p0 }
   0xb   :  { %719 = shalt.err (!%p716_p2)
}
   0xc   :  { %s720_s20 = scalar_lea.vmem %s38_s10, 32  ;;  %p725_p4 = scmp.lt.s32.totalorder %s38_s10, %s38_s10 }
   0xd   :  { %p721_p3 = scmp.ne.s32.totalorder %s38_s10, %s720_s20  ;;  %p726_p5 = scmp.lt.s32.totalorder %s720_s20, %s720_s20 }
   0xf   :  { %p727_p6 = por %p726_p5, %p725_p4 }
  0x11   :  { %p728_p7 = pnand %p727_p6, %p721_p3 }
  0x13   :  { %731 = shalt.err (!%p728_p7)
}
  0x14   :  { %40 = dma.hbm_to_vmem [thread:$0]  %s1299_s2, 32, %s38_s10, [#allocation6]  }
  0x15   :  { %s732_s25 = scalar_lea.hbm %s1301_s4, 32 }
  0x16   :  { %p733_p8 = scmp.ne.s32.totalorder %s1301_s4, %s732_s25  ;;  %p736_p9 = scmp.lt.u32.totalorder %s732_s25, %s1301_s4 }
  0x18   :  { %p738_p10 = pnand %p736_p9, %p733_p8 }
  0x1a   :  { %741 = shalt.err (!%p738_p10)
}
  0x1b   :  { %s742_s30 = scalar_lea.vmem %s58_s12, 32  ;;  %p747_p12 = scmp.lt.s32.totalorder %s58_s12, %s58_s12 }
  0x1c   :  { %p743_p11 = scmp.ne.s32.totalorder %s58_s12, %s742_s30  ;;  %p748_p13 = scmp.lt.s32.totalorder %s742_s30, %s742_s30 }
  0x1e   :  { %p749_p0 = por %p748_p13, %p747_p12 }
  0x20   :  { %p750_p1 = pnand %p749_p0, %p743_p11 }
  0x22   :  { %753 = shalt.err (!%p750_p1)
}
  0x23   :  { %60 = dma.hbm_to_vmem [thread:$0]  %s1301_s4, 32, %s58_s12, [#allocation9]  }
  0x24   :  { %s898_s11 = smov [#allocation11]   ;;  %s899_s14 = smov [#allocation2]  }
  0x25   :  { %s79_s13 = sshll.u32 %s898_s11, 4  ;;  %s25_s15 = sshll.u32 %s899_s14, 4  ;;  %s80_s13 = int_to_ptr.vmem [resolvable:$true] %s79_s13  ;;  %s26_s15 = int_to_ptr.vmem [resolvable:$true] %s25_s15 }
  0x26   :  { %s754_s18 = scalar_lea.hbm %s1304_s7, 256 }
  0x27   :  { %p755_p2 = scmp.ne.s32.totalorder %s1304_s7, %s754_s18  ;;  %p758_p3 = scmp.lt.u32.totalorder %s754_s18, %s1304_s7 }
  0x29   :  { %p760_p4 = pnand %p758_p3, %p755_p2 }
  0x2b   :  { %763 = shalt.err (!%p760_p4)
}
  0x2c   :  { %s764_s4 = scalar_lea.vmem %s80_s13, 256  ;;  %p769_p6 = scmp.lt.s32.totalorder %s80_s13, %s80_s13 }
  0x2d   :  { %p765_p5 = scmp.ne.s32.totalorder %s80_s13, %s764_s4  ;;  %p770_p7 = scmp.lt.s32.totalorder %s764_s4, %s764_s4 }
  0x2f   :  { %p771_p8 = por %p770_p7, %p769_p6 }
  0x31   :  { %p772_p9 = pnand %p771_p8, %p765_p5 }
  0x33   :  { %775 = shalt.err (!%p772_p9)
}
  0x34   :  { %82 = dma.hbm_to_vmem [thread:$0]  %s1304_s7, 256, %s80_s13, [#allocation12]  }
  0x35   :  { %s776_s26 = scalar_lea.hbm %s1297_s0, 32 }
  0x36   :  { %p777_p10 = scmp.ne.s32.totalorder %s1297_s0, %s776_s26  ;;  %p780_p11 = scmp.lt.u32.totalorder %s776_s26, %s1297_s0 }
  0x38   :  { %p782_p12 = pnand %p780_p11, %p777_p10 }
  0x3a   :  { %785 = shalt.err (!%p782_p12)
}
  0x3b   :  { %s786_s2 = scalar_lea.vmem %s26_s15, 32  ;;  %p791_p0 = scmp.lt.s32.totalorder %s26_s15, %s26_s15 }
  0x3c   :  { %p787_p13 = scmp.ne.s32.totalorder %s26_s15, %s786_s2  ;;  %p792_p1 = scmp.lt.s32.totalorder %s786_s2, %s786_s2 }
  0x3e   :  { %p793_p2 = por %p792_p1, %p791_p0 }
  0x40   :  { %p794_p3 = pnand %p793_p2, %p787_p13 }
  0x42   :  { %797 = shalt.err (!%p794_p3)
}
  0x43   :  { %28 = dma.hbm_to_vmem [thread:$0]  %s1297_s0, 32, %s26_s15, [#allocation3]  }
  0x44   :  { %s900_s11 = smov [#allocation7]   ;;  %s901_s14 = smov [#allocation10]  }
  0x45   :  { %s47_s13 = sshll.u32 %s900_s11, 4  ;;  %s69_s16 = sshll.u32 %s901_s14, 4  ;;  %s48_s13 = int_to_ptr.vmem [resolvable:$true] %s47_s13  ;;  %s70_s16 = int_to_ptr.vmem [resolvable:$true] %s69_s16 }
  0x46   :  { %s798_s19 = scalar_lea.hbm %s1300_s3, 32 }
  0x47   :  { %p799_p4 = scmp.ne.s32.totalorder %s1300_s3, %s798_s19  ;;  %p802_p5 = scmp.lt.u32.totalorder %s798_s19, %s1300_s3 }
  0x49   :  { %p804_p6 = pnand %p802_p5, %p799_p4 }
  0x4b   :  { %807 = shalt.err (!%p804_p6)
}
  0x4c   :  { %s808_s0 = scalar_lea.vmem %s48_s13, 32  ;;  %p813_p8 = scmp.lt.s32.totalorder %s48_s13, %s48_s13 }
  0x4d   :  { %p809_p7 = scmp.ne.s32.totalorder %s48_s13, %s808_s0  ;;  %p814_p9 = scmp.lt.s32.totalorder %s808_s0, %s808_s0 }
  0x4f   :  { %p815_p10 = por %p814_p9, %p813_p8 }
  0x51   :  { %p816_p11 = pnand %p815_p10, %p809_p7 }
  0x53   :  { %819 = shalt.err (!%p816_p11)
}
  0x54   :  { %50 = dma.hbm_to_vmem [thread:$0]  %s1300_s3, 32, %s48_s13, [#allocation6]  }
  0x55   :  { %s820_s25 = scalar_lea.hbm %s1303_s6, 256 }
  0x56   :  { %p821_p12 = scmp.ne.s32.totalorder %s1303_s6, %s820_s25  ;;  %p824_p13 = scmp.lt.u32.totalorder %s820_s25, %s1303_s6 }
  0x58   :  { %p826_p0 = pnand %p824_p13, %p821_p12 }
  0x5a   :  { %829 = shalt.err (!%p826_p0)
}
  0x5b   :  { %s830_s30 = scalar_lea.vmem %s70_s16, 256  ;;  %p835_p2 = scmp.lt.s32.totalorder %s70_s16, %s70_s16 }
  0x5c   :  { %p831_p1 = scmp.ne.s32.totalorder %s70_s16, %s830_s30  ;;  %p836_p3 = scmp.lt.s32.totalorder %s830_s30, %s830_s30 }
  0x5e   :  { %p837_p4 = por %p836_p3, %p835_p2 }
  0x60   :  { %p838_p5 = pnand %p837_p4, %p831_p1 }
  0x62   :  { %841 = shalt.err (!%p838_p5)
}
  0x63   :  { %72 = dma.hbm_to_vmem [thread:$0]  %s1303_s6, 256, %s70_s16, [#allocation9]  }
  0x64   :  { %s902_s7 = smov [#allocation13]   ;;  %s842_s14 = scalar_lea.hbm %s1305_s8, 256 }
  0x65   :  { %s89_s10 = sshll.u32 %s902_s7, 4  ;;  %p843_p6 = scmp.ne.s32.totalorder %s1305_s8, %s842_s14  ;;  %s90_s10 = int_to_ptr.vmem [resolvable:$true] %s89_s10 }
  0x66   :  { %p846_p7 = scmp.lt.u32.totalorder %s842_s14, %s1305_s8 }
  0x68   :  { %p848_p8 = pnand %p846_p7, %p843_p6 }
  0x6a   :  { %851 = shalt.err (!%p848_p8)
}
  0x6b   :  { %s852_s21 = scalar_lea.vmem %s90_s10, 256  ;;  %p857_p10 = scmp.lt.s32.totalorder %s90_s10, %s90_s10 }
  0x6c   :  { %p853_p9 = scmp.ne.s32.totalorder %s90_s10, %s852_s21  ;;  %p858_p11 = scmp.lt.s32.totalorder %s852_s21, %s852_s21 }
  0x6e   :  { %p859_p12 = por %p858_p11, %p857_p10 }
  0x70   :  { %p860_p13 = pnand %p859_p12, %p853_p9 }
  0x72   :  { %863 = shalt.err (!%p860_p13)
}
  0x73   :  { %92 = dma.hbm_to_vmem [thread:$0]  %s1305_s8, 256, %s90_s10, [#allocation12]  }
  0x74   :  { %886 = dma.done.wait [#allocation3], 32  }
  0x75   :  { %887 = vsyncadd [#allocation3], 4294967264 }
  0x76   :  { %888 = dma.done.wait [#allocation6], 64  }
  0x77   :  { %889 = vsyncadd [#allocation6], 4294967232 }
  0x78   :  { %890 = dma.done.wait [#allocation9], 288  }
  0x79   :  { %891 = vsyncadd [#allocation9], 4294967008 }
  0x7a   :  { %892 = dma.done.wait [#allocation12], 512  }
  0x7b   :  { %893 = vsyncadd [#allocation12], 4294966784  ;;  %v1044_v0 = vld [vmem:[#allocation2] sm:$0x3]  ;;  %v419_v1 = vld [vmem:[%s1298_s1] sm:$0x3] }
  0x7c   :  { %680 = vlog2.f32 %v1044_v0  ;;  %v421_v2 = vld [vmem:[#allocation7] sm:$0x3]  ;;  %v118_v6 = vld [vmem:[#allocation10] sm:$0xff]  ;;  %vm433_vm0 = vcmask 58368   ;;  %v119_v17 = vld [vmem:[#allocation10 + $0x8] sm:$0xff]  ;;  %s909_s7 = smov [#allocation14]  }
  0x7d   :  { %v1050_v3 = vsub.f32 %v419_v1, %v421_v2  ;;  %v122_v7 = vld [vmem:[#allocation13] sm:$0xff]  ;;  %v123_v18 = vld [vmem:[#allocation13 + $0x8] sm:$0xff]  ;;  %v1059_v24 = vld [vmem:[#allocation5] sm:$0x3]  ;;  %v903_v31 = vmov 683565275  }
  0x7e   :  { %v1056_v10 = vsub.f32 %v118_v6, %v122_v7  ;;  %v1063_v26 = vsub.f32 %v119_v17, %v123_v18  ;;  %v904_v33 = vmov 2475754826   ;;  %v905_v35 = vmov 2131351028   ;;  %s617_s10 = sshll.u32 %s909_s7, 4  ;;  %s618_s10 = int_to_ptr.vmem [resolvable:$true] %s617_s10 }
  0x7f   :  { %v445_v4 = vand.u32 2147483647, %v1050_v3  ;;  %v448_v5 = vand.u32 2139095040, %v1050_v3  ;;  %v906_v37 = vmov 2102212464   ;;  %s864_s11 = scalar_lea.vmem %s618_s10, 128  ;;  %p869_p1 = scmp.lt.s32.totalorder %s618_s10, %s618_s10 }
  0x80   :  { %v143_v15 = vand.u32 2139095040, %v1056_v10  ;;  %v140_v27 = vand.u32 2147483647, %v1056_v10  ;;  %v907_v39 = vmov 920167782   ;;  %p865_p0 = scmp.ne.s32.totalorder %s618_s10, %s864_s11  ;;  %p870_p2 = scmp.lt.s32.totalorder %s864_s11, %s864_s11 }
  0x81   :  { %v449_v8 = vshrl.u32 %v448_v5, 23  ;;  %v452_v9 = vand.u32 8388607, %v445_v4  ;;  %v908_v48 = vmov 1326507024  }
  0x82   :  { %v144_v20 = vshrl.u32 %v143_v15, 23  ;;  %v147_v7 = vand.u32 8388607, %v140_v27  ;;  %p871_p3 = por %p870_p2, %p869_p1 }
  0x83   :  { %v640_v11 = vadd.s32 4294967169, %v449_v8  ;;  %v453_v14 = vor.u32 8388608, %v452_v9 }
  0x84   :  { %v631_v28 = vadd.s32 4294967169, %v144_v20  ;;  %v148_v18 = vor.u32 8388608, %v147_v7  ;;  %p872_p4 = pnand %p871_p3, %p865_p0 }
  0x85   :  { %v455_v12 = vadd.s32 1, %v640_v11  ;;  %v1061_v25 = vshll.u32 %v453_v14, 8 }
  0x86   :  { %v681_v13 = vpop.eup %680  ;;  %v150_v17 = vadd.s32 1, %v631_v28 }
  0x87   :  { %v424_v16 = vmul.f32 0.6931472, %v681_v13  ;;  %vm456_vm1 = vcmp.gt.s32.totalorder %v455_v12, 0 }
  0x88   :  { %v457_v19 = vsel %vm456_vm1, %v455_v12, 0  ;;  %v246_v12 = vand.u32 2139095040, %v1063_v26  ;;  %vm151_vm7 = vcmp.gt.s32.totalorder %v150_v17, 0  ;;  %vm447_vm1 = vcmp.lt.s32.totalorder %v1050_v3, 0 }
  0x89   :  { %v425_v21 = vmul.f32 4.3429446, %v424_v16  ;;  %v458_v22 = vshrl.u32 %v457_v19, 5  ;;  %v459_v23 = vand.u32 31, %v457_v19 }
  0x8b   :  { %v426_v29 = vsub.f32 %v425_v21, %v1059_v24  ;;  %v460_v30 = vsub.s32 32, %v459_v23  ;;  %v462_v32 = vshll.u32 %v903_v31, %v459_v23  ;;  %v465_v34 = vshll.u32 %v904_v33, %v459_v23 }
  0x8c   :  { %v468_v36 = vshll.u32 %v905_v35, %v459_v23  ;;  %v471_v38 = vshll.u32 %v906_v37, %v459_v23  ;;  %v474_v40 = vshll.u32 %v907_v39, %v459_v23  ;;  %vm477_vm2 = vcmp.lt.s32.totalorder %v458_v22, 1 }
  0x8d   :  { %v427_v41 = vand.u32 2147483647, %v426_v29  ;;  %v429_v42 = vmul.f32 0.5, %v426_v29  ;;  %v461_v43 = vshrl.u32 %v903_v31, %v460_v30  ;;  %v463_v44 = vshrl.u32 %v904_v33, %v460_v30 }
  0x8e   :  { %v466_v45 = vshrl.u32 %v905_v35, %v460_v30  ;;  %v469_v46 = vshrl.u32 %v906_v37, %v460_v30  ;;  %v472_v47 = vshrl.u32 %v907_v39, %v460_v30  ;;  %v475_v49 = vshrl.u32 %v908_v48, %v460_v30 }
  0x8f   :  { %vm428_vm3 = vcmp.lt.f32.partialorder %v427_v41, 1.0  ;;  %v430_v50 = vmul.f32 %v429_v42, %v426_v29  ;;  %v639_v51 = vadd.f32 -0.5, %v427_v41  ;;  %v464_v52 = vor.u32 %v463_v44, %v462_v32 }
  0x90   :  { %v467_v53 = vor.u32 %v466_v45, %v465_v34  ;;  %v470_v54 = vor.u32 %v469_v46, %v468_v36  ;;  %v473_v55 = vor.u32 %v472_v47, %v471_v38  ;;  %v476_v56 = vor.u32 %v475_v49, %v474_v40 }
  0x91   :  { %v432_v57 = vsel %vm428_vm3, %v430_v50, %v639_v51  ;;  %vm478_vm4 = vcmp.lt.s32.totalorder %v458_v22, 2  ;;  %vm479_vm5 = vcmp.lt.s32.totalorder %v458_v22, 3  ;;  %vm480_vm6 = vcmp.lt.s32.totalorder %v458_v22, 4 }
  0x92   :  { %v434_v58 = vsel %vm433_vm0, %v432_v57, 0.0  ;;  %v481_v59 = vsel %vm477_vm2, %v461_v43, %v464_v52  ;;  %v482_v60 = vsel %vm480_vm6, %v470_v54, 2102212464  ;;  %v485_v61 = vsel %vm477_vm2, %v464_v52, %v467_v53 }
  0x93   :  { %435 = vadd.xlane.f32.xlu0 %v434_v58  ;;  %v483_v62 = vsel %vm479_vm5, %v467_v53, %v482_v60  ;;  %v486_v63 = vsel %vm480_vm6, %v473_v55, 920167782  ;;  %v489_v1 = vsel %vm477_vm2, %v467_v53, %v470_v54  ;;  %v490_v2 = vsel %vm480_vm6, %v476_v56, 1326507024 }
  0x94   :  { %v487_v5 = vsel %vm479_vm5, %v470_v54, %v486_v63  ;;  %v491_v6 = vsel %vm479_vm5, %v473_v55, %v490_v2  ;;  %v484_v8 = vsel %vm478_vm4, %v481_v59, %v483_v62  ;;  %v152_v21 = vsel %vm151_vm7, %v150_v17, 0 }
  0x95   :  { %v488_v9 = vsel %vm478_vm4, %v485_v61, %v487_v5  ;;  %v492_v11 = vsel %vm478_vm4, %v489_v1, %v491_v6  ;;  %v500_v19 = vmul.u32 %v1061_v25, %v484_v8  ;;  %v247_v22 = vshrl.u32 %v246_v12, 23 }
  0x96   :  { %v1089_v13 = vmul.u32.u64.low %v1061_v25, %v492_v11  ;;  %v1090_v14 = vmul.u32.u64.high %v1061_v25, %v492_v11, %v1089_v13  ;;  %v1093_v15 = vmul.u32.u64.low %v1061_v25, %v488_v9  ;;  %v1094_v16 = vmul.u32.u64.high %v1061_v25, %v488_v9, %v1093_v15 }
  0x97   :  { %v154_v23 = vand.u32 31, %v152_v21  ;;  %v153_v30 = vshrl.u32 %v152_v21, 5  ;;  %v1102_v32 = vshll.u32 %v148_v18, 8  ;;  %v635_v42 = vadd.s32 4294967169, %v247_v22 }
  0x98   :  { %vm502_vm8 = vc.u32 %v1090_v14, %v1093_v15  ;;  %v503_v20 = vadd.s32 1, %v1094_v16  ;;  %v243_v21 = vand.u32 2147483647, %v1063_v26  ;;  %vm1170_vm6 = vcmp.le.f32.partialorder %v445_v4, 0.7853982 }
  0x99   :  { %v155_v36 = vsub.s32 32, %v154_v23  ;;  %v157_v28 = vshll.u32 %v903_v31, %v154_v23  ;;  %v160_v25 = vshll.u32 %v904_v33, %v154_v23  ;;  %v163_v38 = vshll.u32 %v905_v35, %v154_v23 }
  0x9a   :  { %v504_v29 = vsel %vm502_vm8, %v503_v20, %v1094_v16  ;;  %v166_v40 = vshll.u32 %v906_v37, %v154_v23  ;;  %v169_v41 = vshll.u32 %v907_v39, %v154_v23  ;;  %vm172_vm9 = vcmp.lt.s32.totalorder %v153_v30, 1 }
  0x9b   :  { %v505_v34 = vadd.s32 %v504_v29, %v500_v19  ;;  %v156_v44 = vshrl.u32 %v903_v31, %v155_v36  ;;  %v158_v45 = vshrl.u32 %v904_v33, %v155_v36  ;;  %v161_v46 = vshrl.u32 %v905_v35, %v155_v36 }
  0x9c   :  { %v164_v47 = vshrl.u32 %v906_v37, %v155_v36  ;;  %v167_v49 = vshrl.u32 %v907_v39, %v155_v36  ;;  %v170_v50 = vshrl.u32 %v908_v48, %v155_v36  ;;  %vm174_vm10 = vcmp.lt.s32.totalorder %v153_v30, 3 }
  0x9d   :  { %v506_v43 = vadd.s32 536870912, %v505_v34  ;;  %v159_v52 = vor.u32 %v158_v45, %v157_v28  ;;  %v162_v53 = vor.u32 %v161_v46, %v160_v25  ;;  %vm175_vm11 = vcmp.lt.s32.totalorder %v153_v30, 4 }
  0x9e   :  { %v165_v54 = vor.u32 %v164_v47, %v163_v38  ;;  %v168_v55 = vor.u32 %v167_v49, %v166_v40  ;;  %v171_v56 = vor.u32 %v170_v50, %v169_v41  ;;  %vm173_vm12 = vcmp.lt.s32.totalorder %v153_v30, 2 }
  0x9f   :  { %v1115_v51 = vshrl.u32 %v506_v43, 30  ;;  %v176_v58 = vsel %vm172_vm9, %v156_v44, %v159_v52  ;;  %v180_v59 = vsel %vm172_vm9, %v159_v52, %v162_v53  ;;  %v253_v8 = vadd.s32 1, %v635_v42 }
  0xa0   :  { %v177_v60 = vsel %vm175_vm11, %v165_v54, 2102212464  ;;  %v181_v61 = vsel %vm175_vm11, %v168_v55, 920167782  ;;  %v184_v62 = vsel %vm172_vm9, %v162_v53, %v165_v54  ;;  %v185_v63 = vsel %vm175_vm11, %v171_v56, 1326507024 }
  0xa1   :  { %v508_v57 = vshll.u32 %v1115_v51, 30  ;;  %v178_v2 = vsel %vm174_vm10, %v162_v53, %v177_v60  ;;  %v182_v5 = vsel %vm174_vm10, %v165_v54, %v181_v61  ;;  %v186_v7 = vsel %vm174_vm10, %v168_v55, %v185_v63 }
  0xa2   :  { %v183_v6 = vsel %vm173_vm12, %v180_v59, %v182_v5  ;;  %v179_v11 = vsel %vm173_vm12, %v176_v58, %v178_v2  ;;  %v187_v12 = vsel %vm173_vm12, %v184_v62, %v186_v7  ;;  %v559_v20 = vmul.f32 0.23025851, %v1059_v24 }
  0xa3   :  { %v509_v1 = vsub.s32 %v505_v34, %v508_v57  ;;  %v1122_v13 = vmul.u32.u64.low %v1102_v32, %v187_v12  ;;  %v1123_v16 = vmul.u32.u64.high %v1102_v32, %v187_v12, %v1122_v13  ;;  %vm254_vm13 = vcmp.gt.s32.totalorder %v253_v8, 0 }
  0xa4   :  { %v1126_v17 = vmul.u32.u64.low %v1102_v32, %v183_v6  ;;  %v1127_v18 = vmul.u32.u64.high %v1102_v32, %v183_v6, %v1126_v17  ;;  %v195_v23 = vmul.u32 %v1102_v32, %v179_v11  ;;  %v255_v29 = vsel %vm254_vm13, %v253_v8, 0 }
  0xa5   :  { %v511_v9 = vsub.s32 0, %v509_v1  ;;  %v257_v36 = vand.u32 31, %v255_v29  ;;  %v1136_v28 = vmul.f32 1.442695, %v559_v20  ;;  %v501_v25 = vadd.s32 %v1093_v15, %v1090_v14 }
  0xa6   :  { %vm197_vm14 = vc.u32 %v1123_v16, %v1126_v17  ;;  %v198_v30 = vadd.s32 1, %v1127_v18  ;;  %v250_v38 = vand.u32 8388607, %v243_v21  ;;  %v1143_v40 = vshrl.u32 %v255_v29, 5 }
  0xa7   :  { %v641_v19 = vmin.u32 %v511_v9, %v509_v1  ;;  %v258_v41 = vsub.s32 32, %v257_v36  ;;  %v260_v43 = vshll.u32 %v903_v31, %v257_v36  ;;  %v263_v44 = vshll.u32 %v904_v33, %v257_v36 }
  0xa8   :  { %v199_v24 = vsel %vm197_vm14, %v198_v30, %v1127_v18  ;;  %v266_v45 = vshll.u32 %v905_v35, %v257_v36  ;;  %v269_v53 = vshll.u32 %v906_v37, %v257_v36  ;;  %v251_v58 = vor.u32 8388608, %v250_v38 }
  0xa9   :  { %v513_v22 = vclz %v641_v19  ;;  %v200_v32 = vadd.s32 %v199_v24, %v195_v23  ;;  %v261_v49 = vshrl.u32 %v904_v33, %v258_v41  ;;  %v264_v50 = vshrl.u32 %v905_v35, %v258_v41 }
  0xaa   :  { %v267_v52 = vshrl.u32 %v906_v37, %v258_v41  ;;  %v270_v57 = vshrl.u32 %v907_v39, %v258_v41  ;;  %v272_v59 = vshll.u32 %v907_v39, %v257_v36  ;;  %vm275_vm2 = vcmp.lt.s32.totalorder %v1143_v40, 1 }
  0xab   :  { %v642_v34 = vadd.s32 4294967294, %v513_v22  ;;  %v201_v15 = vadd.s32 536870912, %v200_v32  ;;  %v262_v61 = vor.u32 %v261_v49, %v260_v43  ;;  %v265_v62 = vor.u32 %v264_v50, %v263_v44 }
  0xac   :  { %v268_v37 = vor.u32 %v267_v52, %v266_v45  ;;  %v271_v63 = vor.u32 %v270_v57, %v269_v53  ;;  %vm278_vm3 = vcmp.lt.s32.totalorder %v1143_v40, 4  ;;  %v259_v7 = vshrl.u32 %v903_v31, %v258_v41 }
  0xad   :  { %vm643_vm15 = vcmp.lt.s32.totalorder %v642_v34, 0  ;;  %v1152_v56 = vshrl.u32 %v201_v15, 30  ;;  %vm276_vm4 = vcmp.lt.s32.totalorder %v1143_v40, 2  ;;  %v291_v8 = vshll.u32 %v251_v58, 8 }
  0xae   :  { %v516_v42 = vsel %vm643_vm15, 0, %v642_v34  ;;  %vm277_vm5 = vcmp.lt.s32.totalorder %v1143_v40, 3  ;;  %v280_v12 = vsel %vm278_vm3, %v268_v37, 2102212464  ;;  %v283_v13 = vsel %vm275_vm2, %v262_v61, %v265_v62 }
  0xaf   :  { %v517_v46 = vsub.s32 32, %v516_v42  ;;  %v518_v47 = vshll.u32 %v509_v1, %v516_v42  ;;  %v521_v14 = vsub.s32 4294967266, %v516_v42  ;;  %v203_v35 = vshll.u32 %v1152_v56, 30 }
  0xb0   :  { %v273_v1 = vshrl.u32 %v908_v48, %v258_v41  ;;  %v284_v48 = vsel %vm278_vm3, %v271_v63, 920167782  ;;  %v287_v18 = vsel %vm275_vm2, %v265_v62, %v268_v37  ;;  %v531_v22 = vsub.s32 4, %v1115_v51 }
  0xb1   :  { %v519_v54 = vshrl.u32 %v501_v25, %v517_v46  ;;  %v522_v55 = vadd.s32 127, %v521_v14  ;;  %v204_v6 = vsub.s32 %v200_v32, %v203_v35  ;;  %v279_v29 = vsel %vm275_vm2, %v259_v7, %v262_v61 }
  0xb2   :  { %v274_v39 = vor.u32 %v273_v1, %v272_v59  ;;  %v281_v30 = vsel %vm277_vm5, %v265_v62, %v280_v12  ;;  %v285_v34 = vsel %vm277_vm5, %v268_v37, %v284_v48  ;;  %682 = vpow2.f32 %v1136_v28 }
  0xb3   :  { %v520_v33 = vor.u32 %v519_v54, %v518_v47  ;;  %v523_v60 = vshll.u32 %v522_v55, 23  ;;  %v206_v11 = vsub.s32 0, %v204_v6  ;;  %v286_v38 = vsel %vm276_vm4, %v283_v13, %v285_v34 }
  0xb4   :  { %v288_v19 = vsel %vm278_vm3, %v274_v39, 1326507024  ;;  %v1184_v42 = vmul.u32.u64.low %v291_v8, %v286_v38  ;;  %v1185_v43 = vmul.u32.u64.high %v291_v8, %v286_v38, %v1184_v42  ;;  %v282_v46 = vsel %vm276_vm4, %v279_v29, %v281_v30 }
  0xb5   :  { %v524_v2 = vor.u32 4788187, %v523_v60  ;;  %v527_v5 = vcvt.s32.f32 %v520_v33  ;;  %v632_v23 = vmin.u32 %v206_v11, %v204_v6  ;;  %v289_v36 = vsel %vm277_vm5, %v271_v63, %v288_v19  ;;  %v1210_v33 = vld [vmem:[%s1302_s5] sm:$0xff] }
  0xb6   :  { %v290_v4 = vsel %vm276_vm4, %v287_v18, %v289_v36  ;;  %v532_v14 = vsel %vm447_vm1, %v531_v22, %v1115_v51  ;;  %v196_v15 = vadd.s32 %v1126_v17, %v1123_v16  ;;  %v298_v49 = vmul.u32 %v291_v8, %v282_v46  ;;  %v1220_v18 = vld [vmem:[#allocation11] sm:$0xff] }
  0xb7   :  { %v525_v9 = vand.u32 2147483647, %v524_v2  ;;  %v208_v24 = vclz %v632_v23  ;;  %v1181_v32 = vmul.u32.u64.low %v291_v8, %v290_v4  ;;  %v1182_v41 = vmul.u32.u64.high %v291_v8, %v290_v4, %v1181_v32 }
  0xb8   :  { %v301_v53 = vadd.s32 1, %v1185_v43  ;;  %v534_v54 = vsel %vm1170_vm6, 0, %v532_v14  ;;  %v565_v37 = vmul.f32 2.0, %v1044_v0  ;;  %v562_v2 = vmul.f32 %v1044_v0, %v1044_v0 }
  0xb9   :  { %v528_v20 = vmul.f32 %v527_v5, %v525_v9  ;;  %v633_v45 = vadd.s32 4294967294, %v208_v24  ;;  %vm300_vm8 = vc.u32 %v1182_v41, %v1184_v42  ;;  %v538_v17 = vand.u32 3, %v534_v54 }
  0xba   :  { %v302_v57 = vsel %vm300_vm8, %v301_v53, %v1185_v43  ;;  %vm537_vm11 = vweird.f32 %v1050_v3  ;;  %vm142_vm13 = vcmp.lt.s32.totalorder %v1056_v10, 0  ;;  %vm1225_vm14 = vcmp.le.f32.partialorder %v140_v27, 0.7853982 }
  0xbb   :  { %v529_v25 = vxor.u32 2147483648, %v528_v20  ;;  %vm634_vm7 = vcmp.lt.s32.totalorder %v633_v45, 0  ;;  %v303_v16 = vadd.s32 %v302_v57, %v298_v49  ;;  %vm543_vm9 = vcmp.eq.s32.totalorder %v538_v17, 2 }
  0xbc   :  { %v211_v28 = vsel %vm634_vm7, 0, %v633_v45  ;;  %v683_v35 = vpop.eup %682  ;;  %vm540_vm10 = vcmp.eq.s32.totalorder %v538_v17, 0  ;;  %vm539_vm12 = vcmp.lt.s32.totalorder %v538_v17, 2  ;;  %v226_v22 = vsub.s32 4, %v1152_v56 }
  0xbd   :  { %v530_v44 = vsel %vm447_vm1, %v529_v25, %v528_v20  ;;  %v212_v40 = vsub.s32 32, %v211_v28  ;;  %v213_v50 = vshll.u32 %v204_v6, %v211_v28  ;;  %v216_v52 = vsub.s32 4294967266, %v211_v28  ;;  %v1247_v28 = vld [vmem:[%s1302_s5 + $0x8] sm:$0xff] }
  0xbe   :  { %v533_v47 = vsel %vm1170_vm6, %v1050_v3, %v530_v44  ;;  %v304_v60 = vadd.s32 536870912, %v303_v16  ;;  %v348_v6 = vmul.f32 0.23025851, %v1210_v33  ;;  %v563_v8 = vmul.f32 %v683_v35, %v683_v35 }
  0xbf   :  { %684 = vcosq.f32 %v533_v47  ;;  %v214_v51 = vshrl.u32 %v196_v15, %v212_v40  ;;  %v217_v55 = vadd.s32 127, %v216_v52  ;;  %v566_v48 = vmul.f32 %v683_v35, %v565_v37 }
  0xc0   :  { %686 = vsinq.f32 %v533_v47  ;;  %v1213_v63 = vshrl.u32 %v304_v60, 30  ;;  %v564_v29 = vadd.f32 %v563_v8, %v562_v2  ;;  %v350_v25 = vmul.f32 1.442695, %v348_v6 }
  0xc1   :  { %v215_v58 = vor.u32 %v214_v51, %v213_v50  ;;  %v218_v59 = vshll.u32 %v217_v55, 23  ;;  %v354_v24 = vmul.f32 0.23025851, %v1220_v18  ;;  %v227_v43 = vsel %vm142_vm13, %v226_v22, %v1152_v56  ;;  %v1252_v55 = vld [vmem:[#allocation11 + $0x8] sm:$0xff] }
  0xc2   :  { %v306_v9 = vshll.u32 %v1213_v63, 30  ;;  %v229_v15 = vsel %vm1225_vm14, 0, %v227_v43  ;;  %v299_v56 = vadd.s32 %v1184_v42, %v1182_v41  ;;  %v349_v54 = vmul.f32 0.23025851, %v1247_v28 }
  0xc3   :  { %v219_v61 = vor.u32 4788187, %v218_v59  ;;  %v222_v62 = vcvt.s32.f32 %v215_v58  ;;  %v356_v46 = vmul.f32 1.442695, %v354_v24  ;;  %v233_v49 = vand.u32 3, %v229_v15 }
  0xc4   :  { %v307_v0 = vsub.s32 %v303_v16, %v306_v9  ;;  %v352_v35 = vmul.f32 1.442695, %v349_v54  ;;  %vm232_vm6 = vweird.f32 %v1056_v10  ;;  %vm1259_vm7 = vcmp.le.f32.partialorder %v243_v21, 0.7853982 }
  0xc5   :  { %v220_v5 = vand.u32 2147483647, %v219_v61  ;;  %vm235_vm1 = vcmp.eq.s32.totalorder %v233_v49, 0  ;;  %vm238_vm2 = vcmp.eq.s32.totalorder %v233_v49, 2  ;;  %vm234_vm3 = vcmp.lt.s32.totalorder %v233_v49, 2 }
  0xc6   :  { %v309_v30 = vsub.s32 0, %v307_v0  ;;  %v355_v61 = vmul.f32 0.23025851, %v1252_v55  ;;  %vm245_vm8 = vcmp.lt.s32.totalorder %v1063_v26, 0  ;;  %v329_v21 = vsub.s32 4, %v1213_v63 }
  0xc7   :  { %v223_v12 = vmul.f32 %v222_v62, %v220_v5 }
  0xc8   :  { %v636_v32 = vmin.u32 %v309_v30, %v307_v0  ;;  %v330_v24 = vsel %vm245_vm8, %v329_v21, %v1213_v63 }
  0xc9   :  { %v685_v1 = vpop.eup %684  ;;  %v224_v20 = vxor.u32 2147483648, %v223_v12 }
  0xca   :  { %v687_v7 = vpop.eup %686  ;;  %v544_v39 = vxor.u32 2147483648, %v685_v1  ;;  %v311_v45 = vclz %v636_v32 }
  0xcb   :  { %v541_v11 = vxor.u32 2147483648, %v687_v7  ;;  %v225_v36 = vsel %vm142_vm13, %v224_v20, %v223_v12 }
  0xcc   :  { %v545_v13 = vsel %vm543_vm9, %v544_v39, %v687_v7  ;;  %v228_v4 = vsel %vm1225_vm14, %v1056_v10, %v225_v36  ;;  %v637_v14 = vadd.s32 4294967294, %v311_v45 }
  0xcd   :  { %v542_v19 = vsel %vm540_vm10, %v685_v1, %v541_v11  ;;  %688 = vcosq.f32 %v228_v4 }
  0xce   :  { %v546_v23 = vsel %vm539_vm12, %v542_v19, %v545_v13  ;;  %690 = vsinq.f32 %v228_v4  ;;  %vm638_vm15 = vcmp.lt.s32.totalorder %v637_v14, 0 }
  0xcf   :  { %v547_v34 = vsel %vm537_vm11, nan, %v546_v23  ;;  %692 = vpow2.f32 %v350_v25  ;;  %v314_v40 = vsel %vm638_vm15, 0, %v637_v14  ;;  %vm335_vm11 = vweird.f32 %v1063_v26 }
  0xd0   :  { %v548_v38 = vsub.f32 1.0, %v547_v34  ;;  %v567_v27 = vmul.f32 %v566_v48, %v547_v34  ;;  %v315_v50 = vsub.s32 32, %v314_v40  ;;  %v316_v52 = vshll.u32 %v307_v0, %v314_v40 }
  0xd1   :  { %v319_v53 = vsub.s32 4294967266, %v314_v40  ;;  %v358_v0 = vmul.f32 1.442695, %v355_v61 }
  0xd2   :  { %v549_v3 = vsel %vm433_vm0, %v548_v38, 0.0  ;;  %v568_v44 = vsub.f32 %v564_v29, %v567_v27  ;;  %v317_v57 = vshrl.u32 %v299_v56, %v315_v50  ;;  %v332_v38 = vsel %vm1259_vm7, 0, %v330_v24 }
  0xd3   :  { %550 = vadd.xlane.f32.xlu1 %v549_v3  ;;  %v320_v16 = vadd.s32 127, %v319_v53  ;;  %v336_v32 = vand.u32 3, %v332_v38  ;;  %v124_v50 = vsub.f32 %v1210_v33, %v1220_v18 }
  0xd4   :  { %v569_v47 = vmax.f32 %v568_v44, 0.0  ;;  %v318_v42 = vor.u32 %v317_v57, %v316_v52 }
  0xd5   :  { %v321_v60 = vshll.u32 %v320_v16, 23  ;;  %vm338_vm9 = vcmp.eq.s32.totalorder %v336_v32, 0  ;;  %vm337_vm10 = vcmp.lt.s32.totalorder %v336_v32, 2  ;;  %v126_v16 = vand.u32 2147483647, %v124_v50 }
  0xd6   :  { %694 = vrsqrt.f32 %v569_v47  ;;  %v325_v2 = vcvt.s32.f32 %v318_v42  ;;  %vm572_vm4 = vcmp.eq.f32.partialorder %v569_v47, inf  ;;  %v575_v6 = vand.u32 2147483648, %v569_v47 }
  0xd7   :  { %696 = vpow2.f32 %v356_v46  ;;  %v689_v51 = vpop.eup %688  ;;  %v322_v1 = vor.u32 4788187, %v321_v60  ;;  %vm574_vm5 = vcmp.eq.f32.partialorder %v569_v47, 0.0  ;;  %vm128_vm12 = vcmp.lt.f32.partialorder %v126_v16, 1.0 }
  0xd8   :  { %v691_v17 = vpop.eup %690  ;;  %v239_v58 = vxor.u32 2147483648, %v689_v51  ;;  %698 = vpow2.f32 %v352_v35  ;;  %v629_v35 = vadd.f32 -0.5, %v126_v16 }
  0xd9   :  { %v693_v59 = vpop.eup %692  ;;  %v236_v41 = vxor.u32 2147483648, %v691_v17  ;;  %v323_v9 = vand.u32 2147483647, %v322_v1  ;;  %700 = vpow2.f32 %v358_v0 }
  0xda   :  { %v240_v37 = vsel %vm238_vm2, %v239_v58, %v691_v17  ;;  %v366_v7 = vmul.f32 2.0, %v693_v59  ;;  %v360_v31 = vmul.f32 %v693_v59, %v693_v59  ;;  %v130_v17 = vmul.f32 0.5, %v124_v50 }
  0xdb   :  { %v237_v62 = vsel %vm235_vm1, %v689_v51, %v236_v41  ;;  %v326_v48 = vmul.f32 %v325_v2, %v323_v9  ;;  %v125_v51 = vsub.f32 %v1247_v28, %v1252_v55 }
  0xdc   :  { %v241_v11 = vsel %vm234_vm3, %v237_v62, %v240_v37  ;;  %v132_v60 = vmul.f32 %v130_v17, %v124_v50  ;;  %vm587_vm3 = vcmask 254976  }
  0xdd   :  { %v1265_v23 = vsel %vm232_vm6, nan, %v241_v11  ;;  %v327_v29 = vxor.u32 2147483648, %v326_v48  ;;  %v127_v41 = vand.u32 2147483647, %v125_v51  ;;  %v131_v42 = vmul.f32 0.5, %v125_v51 }
  0xde   :  { %v346_v62 = vsub.f32 1.0, %v1265_v23  ;;  %v136_v28 = vsel %vm128_vm12, %v132_v60, %v629_v35  ;;  %v114_v35 = vlaneseq }
  0xdf   :  { %v328_v30 = vsel %vm245_vm8, %v327_v29, %v326_v48  ;;  %v133_v33 = vmul.f32 %v131_v42, %v125_v51  ;;  %v630_v18 = vadd.f32 -0.5, %v127_v41  ;;  %vm129_vm14 = vcmp.lt.f32.partialorder %v127_v41, 1.0  ;;  %v422_v29 = vld [vmem:[#allocation8] sm:$0x3] }
  0xe0   :  { %v695_v5 = vpop.eup %694  ;;  %v331_v34 = vsel %vm1259_vm7, %v1063_v26, %v328_v30  ;;  %v588_v21 = vsel %vm587_vm3, %v422_v29, 0.0 }
  0xe1   :  { %v697_v39 = vpop.eup %696  ;;  %v571_v8 = vmul.f32 %v695_v5, %v569_v47  ;;  %702 = vcosq.f32 %v331_v34  ;;  %v137_v2 = vsel %vm129_vm14, %v133_v33, %v630_v18  ;;  %v390_v5 = vmul.f32 0.0009765625, %v136_v28 }
  0xe2   :  { %v362_v20 = vmul.f32 %v697_v39, %v697_v39  ;;  %v368_v22 = vmul.f32 %v697_v39, %v366_v7  ;;  %704 = vsinq.f32 %v331_v34  ;;  %v699_v4 = vpop.eup %698  ;;  %v391_v39 = vmul.f32 0.0009765625, %v137_v2 }
  0xe3   :  { %v573_v13 = vsel %vm572_vm4, %v569_v47, %v571_v8  ;;  %v701_v3 = vpop.eup %700  ;;  %v367_v44 = vmul.f32 2.0, %v699_v4  ;;  %v361_v46 = vmul.f32 %v699_v4, %v699_v4 }
  0xe4   :  { %v576_v19 = vsel %vm574_vm5, %v575_v6, %v573_v13  ;;  %v364_v36 = vadd.f32 %v362_v20, %v360_v31  ;;  %v370_v25 = vmul.f32 %v368_v22, %v1265_v23  ;;  %v363_v15 = vmul.f32 %v701_v3, %v701_v3 }
  0xe5   :  { %v577_v10 = vsel %vm433_vm0, %v576_v19, 0.0  ;;  %vm341_vm0 = vcmp.eq.s32.totalorder %v336_v32, 2  ;;  %v369_v49 = vmul.f32 %v701_v3, %v367_v44  ;;  %v392_v6 = vmul.f32 0.0009765625, %v346_v62 }
  0xe6   :  { %578 = vadd.xlane.f32.xlu1 %v577_v10  ;;  %v372_v27 = vsub.f32 %v364_v36, %v370_v25  ;;  %v365_v53 = vadd.f32 %v363_v15, %v361_v46 }
  0xe7   :  { %v394_v13 = vadd.f32 %v392_v6, %v390_v5 }
  0xe8   :  { %v374_v43 = vmax.f32 %v372_v27, 0.0 }
  0xea   :  { %706 = vrsqrt.f32 %v374_v43  ;;  %vm378_vm13 = vcmp.eq.f32.partialorder %v374_v43, inf  ;;  %v381_v55 = vand.u32 2147483648, %v374_v43  ;;  %vm380_vm15 = vcmp.eq.f32.partialorder %v374_v43, 0.0 }
  0xeb   :  { %v703_v45 = vpop.eup %702 }
  0xec   :  { %v705_v47 = vpop.eup %704  ;;  %v342_v14 = vxor.u32 2147483648, %v703_v45 }
  0xed   :  { %v339_v63 = vxor.u32 2147483648, %v705_v47 }
  0xee   :  { %v343_v56 = vsel %vm341_vm0, %v342_v14, %v705_v47 }
  0xef   :  { %v340_v40 = vsel %vm338_vm9, %v703_v45, %v339_v63 }
  0xf0   :  { %v344_v52 = vsel %vm337_vm10, %v340_v40, %v343_v56 }
  0xf1   :  { %v345_v54 = vsel %vm335_vm11, nan, %v344_v52 }
  0xf2   :  { %v371_v57 = vmul.f32 %v369_v49, %v345_v54  ;;  %v347_v37 = vsub.f32 1.0, %v345_v54 }
  0xf4   :  { %v373_v58 = vsub.f32 %v365_v53, %v371_v57  ;;  %v707_v59 = vpop.eup %706  ;;  %v393_v8 = vmul.f32 0.0009765625, %v347_v37 }
  0xf5   :  { %v377_v61 = vmul.f32 %v707_v59, %v374_v43 }
  0xf6   :  { %v375_v26 = vmax.f32 %v373_v58, 0.0  ;;  %v395_v19 = vadd.f32 %v393_v8, %v391_v39 }
  0xf7   :  { %v379_v1 = vsel %vm378_vm13, %v374_v43, %v377_v61  ;;  %v115_v61 = vand.u32 127, %v114_v35 }
  0xf8   :  { %708 = vrsqrt.f32 %v375_v26  ;;  %v382_v7 = vsel %vm380_vm15, %v381_v55, %v379_v1  ;;  %vm385_vm1 = vcmp.eq.f32.partialorder %v375_v26, inf  ;;  %v388_v11 = vand.u32 2147483648, %v375_v26 }
  0xf9   :  { %vm387_vm2 = vcmp.eq.f32.partialorder %v375_v26, 0.0  ;;  %v396_v48 = vmul.f32 9.765625e-06, %v382_v7  ;;  %vm410_vm4 = vcmp.eq.s32.totalorder %v115_v61, 0  ;;  %vm606_vm5 = vcmp.eq.s32.totalorder %v115_v61, 1 }
  0xfb   :  { %v398_v22 = vadd.f32 %v396_v48, %v394_v13 }
 0x102   :  { %v709_v9 = vpop.eup %708 }
 0x103   :  { %v384_v12 = vmul.f32 %v709_v9, %v375_v26 }
 0x105   :  { %v386_v0 = vsel %vm385_vm1, %v375_v26, %v384_v12 }
 0x106   :  { %v389_v31 = vsel %vm387_vm2, %v388_v11, %v386_v0 }
 0x107   :  { %v397_v20 = vmul.f32 9.765625e-06, %v389_v31 }
 0x109   :  { %v399_v10 = vadd.f32 %v397_v20, %v395_v19 }
 0x10b   :  { %v400_v23 = vadd.f32 %v399_v10, %v398_v22 }
 0x10d   :  { %401 = vadd.xlane.f32.xlu0 %v400_v23 }
 0x111   :  { %589 = vadd.xlane.f32.xlu0 %v588_v21 }
 0x120   :  { %v436_v34 = vpop.xlane.xlu0 %435 }
 0x121   :  { %v437_v25 = vrot.slane %v436_v34, 4 }
 0x123   :  { %v438_v27 = vadd.f32 %v437_v25, %v436_v34 }
 0x125   :  { %v439_v43 = vrot.slane %v438_v27, 2 }
 0x127   :  { %v440_v15 = vadd.f32 %v439_v43, %v438_v27 }
 0x129   :  { %v441_v53 = vrot.slane %v440_v15, 1 }
 0x12b   :  { %v442_v59 = vadd.f32 %v441_v53, %v440_v15 }
 0x160   :  { %v551_v30 = vpop.xlane.xlu1 %550 }
 0x161   :  { %v552_v24 = vrot.slane %v551_v30, 4 }
 0x163   :  { %v553_v4 = vadd.f32 %v552_v24, %v551_v30 }
 0x165   :  { %v554_v44 = vrot.slane %v553_v4, 2 }
 0x167   :  { %v555_v49 = vadd.f32 %v554_v44, %v553_v4 }
 0x169   :  { %v556_v57 = vrot.slane %v555_v49, 1 }
 0x16b   :  { %v557_v41 = vadd.f32 %v556_v57, %v555_v49 }
 0x173   :  { %v579_v36 = vpop.xlane.xlu1 %578 }
 0x174   :  { %v580_v38 = vrot.slane %v579_v36, 4 }
 0x176   :  { %v581_v32 = vadd.f32 %v580_v38, %v579_v36 }
 0x178   :  { %v582_v46 = vrot.slane %v581_v32, 2 }
 0x17a   :  { %v583_v40 = vadd.f32 %v582_v46, %v581_v32 }
 0x17c   :  { %v584_v16 = vrot.slane %v583_v40, 1 }
 0x17e   :  { %v585_v26 = vadd.f32 %v584_v16, %v583_v40 }
 0x19a   :  { %v402_v3 = vpop.xlane.xlu0 %401 }
 0x19b   :  { %v403_v45 = vrot.slane %v402_v3, 4 }
 0x19d   :  { %v404_v47 = vadd.f32 %v403_v45, %v402_v3 }
 0x19e   :  { %v590_v14 = vpop.xlane.xlu0 %589 }
 0x19f   :  { %v405_v63 = vrot.slane %v404_v47, 2  ;;  %v591_v56 = vrot.slane %v590_v14, 4 }
 0x1a1   :  { %v592_v50 = vadd.f32 %v591_v56, %v590_v14  ;;  %v406_v52 = vadd.f32 %v405_v63, %v404_v47 }
 0x1a3   :  { %v593_v54 = vrot.slane %v592_v50, 2  ;;  %v407_v51 = vrot.slane %v406_v52, 1 }
 0x1a5   :  { %v594_v17 = vadd.f32 %v593_v54, %v592_v50  ;;  %v408_v58 = vadd.f32 %v407_v51, %v406_v52 }
 0x1a7   :  { %652 = vpush %v408_v58  ;;  %v595_v42 = vrot.slane %v594_v17, 1 }
 0x1a8   :  { %654 = vpush %v442_v59 }
 0x1a9   :  { %660 = vpush %v557_v41  ;;  %v596_v60 = vadd.f32 %v595_v42, %v594_v17 }
 0x1aa   :  { %662 = vpush %v585_v26 }
 0x1ab   :  { %664 = vpush %v596_v60 }
 0x1d8   :  { %s653_s5 = spop %652 }
 0x1d9   :  { %s655_s12 = spop %654  ;;  %v411_v33 = vstv %s653_s5 }
 0x1da   :  { %s598_s23 = smul.f32 0.0625, %s655_s12  ;;  %s661_s24 = spop %660  ;;  %v412_v62 = vsel %vm410_vm4, %v411_v33, 0.0 }
 0x1db   :  { %s599_s25 = smul.f32 0.0625, %s661_s24  ;;  %s663_s26 = spop %662 }
 0x1dc   :  { %s601_s27 = smul.f32 0.000625, %s663_s26  ;;  %s665_s28 = spop %664 }
 0x1dd   :  { %s600_s29 = sadd.f32 %s599_s25, %s598_s23  ;;  %s603_s30 = smul.f32 1.5625e-06, %s665_s28 }
 0x1df   :  { %s602_s3 = sadd.f32 %s601_s27, %s600_s29 }
 0x1e1   :  { %s604_s2 = sadd.f32 %s603_s30, %s602_s3 }
 0x1e3   :  { %v607_v18 = vstv %s604_s2 }
 0x1e4   :  { %v608_v28 = vsel %vm606_vm5, %v607_v18, 0.0 }
 0x1e5   :  { %v609_v55 = vadd.f32 %v608_v28, %v412_v62 }
 0x1e7   :  { %610 = vst [vmem:[#allocation14] sm:$0xff] %v609_v55 }
 0x1e8   :  { %875 = shalt.err (!%p872_p4)
}
 0x1e9   :  { %s876_s17 = scalar_lea.hbm %s1306_s9, 128 }
 0x1ea   :  { %p877_p5 = scmp.ne.s32.totalorder %s1306_s9, %s876_s17  ;;  %p880_p6 = scmp.lt.u32.totalorder %s876_s17, %s1306_s9 }
 0x1ec   :  { %p882_p7 = pnand %p880_p6, %p877_p5 }
 0x1ee   :  { %885 = shalt.err (!%p882_p7)
}
 0x1ef   :  { %620 = dma.vmem_to_hbm [thread:$0]  %s618_s10, 128, %s1306_s9, [#allocation4]  }
 0x1f0   :  { %894 = dma.done.wait [#allocation4], 128  }
 0x1f1   :  { %895 = vsyncadd [#allocation4], 4294967168 }
 0x1f2   :  { %624 = vsyncpa [#allocation3], 1 }
 0x1f3   :  { %625 = vsyncpa [#allocation6], 1 }
 0x1f4   :  { %626 = vsyncpa [#allocation9], 1 }
 0x1f5   :  { %627 = vsyncpa [#allocation12], 1 }
 0x1f6   :  { %628 = vsyncpa [#allocation4], 1 }

</bundles_post_ra>
